<compile_context>
chip_gen: v5e
topology: v5e:2x2
jax: 0.10.0
libtpu: 0.0.40
codegen_flags: <defaults>
</compile_context>

<pallas_src>
from functools import partial

import jax
import jax.numpy as jnp
from jax.experimental import pallas as pl
from jax.experimental.pallas import tpu as pltpu

DIMS = [11, 22, 33, 44, 55, 66, 55, 44, 33, 22, 11, 5]
N_LAYERS = len(DIMS) - 1
IN_DIM = DIMS[0]
OUT_DIM = DIMS[-1]
PAD = 128      # lane-aligned padded feature width for the MXU
OUT_PAD = 8    # padded output width (last dim == full array dim -> legal block)


def _round_up(n, m):
    return ((n + m - 1) // m) * m


def _pick_tile(batch, tb_max=1024):
    """Batch-tile size + grid length.

    Small batches: one exact block (block dims == full array dims are always
    legal).  Large batches: tile is a multiple of 8, <= tb_max, and chosen so
    the 1-D parallel grid has >= 2 (ideally >= 8) steps so both v7x
    TensorCores get work."""
    if batch <= 512:
        return batch, 1
    tb = min(tb_max, max(512, _round_up(pl.cdiv(batch, 8), 8)))
    return tb, pl.cdiv(batch, tb)


def mlp_kernel(x_ref, w_ref, b_ref, out_ref, h_scratch):
    """x_ref:  (tb, 11)  f32 batch tile (streamed)
       w_ref:  (11, 128, 128) bf16, grid-invariant -> resident in VMEM
       b_ref:  (11, 1, 128)  act-dtype (bf16 on v6e/v7x, f32 on v5e), resident
       out_ref:(tb, 8)   f32
       h_scratch: (tb, 128) f32 scratch used to zero-widen the 11-wide input."""
    act_dtype = b_ref.dtype

    # Widen the 11-lane input to 128 zero-padded lanes.  Zeroed every tile so
    # stale VMEM (possibly NaN) never reaches the MXU on either TensorCore.
    h_scratch[...] = jnp.zeros_like(h_scratch)
    h_scratch[:, :IN_DIM] = x_ref[...]
    h = h_scratch[...].astype(jnp.bfloat16)            # bf16 MXU operand

    for i in range(N_LAYERS):                           # static unroll, 11 layers
        acc = jnp.dot(h, w_ref[i], preferred_element_type=jnp.float32)
        if i < N_LAYERS - 1:
            z = jnp.maximum(acc.astype(act_dtype) + b_ref[i], 0)
            h = z.astype(jnp.bfloat16)                  # next layer's MXU operand
        else:
            out = acc + b_ref[i].astype(jnp.float32)
            out_ref[...] = out[:, :OUT_PAD]             # only 8 lanes written back


def init_params(key):
    """Deterministic PyTorch-Linear-style init (uniform +-1/sqrt(fan_in))."""
    params = []
    for i in range(N_LAYERS):
        fan_in, fan_out = DIMS[i], DIMS[i + 1]
        key, kw, kb = jax.random.split(key, 3)
        bound = 1.0 / float(fan_in) ** 0.5
        w = jax.random.uniform(kw, (fan_in, fan_out), jnp.float32, -bound, bound)
        b = jax.random.uniform(kb, (fan_out,), jnp.float32, -bound, bound)
        params.append((w, b))
    return params


def default_act_dtype():
    """bf16 elementwise path on bf16-capable VPUs (v6e/v7x); f32 otherwise."""
    try:
        kind = jax.devices()[0].device_kind.lower()
    except Exception:
        return jnp.bfloat16
    if any(tag in kind for tag in ("v2", "v3", "v4", "v5")):
        return jnp.float32
    return jnp.bfloat16


def pad_and_stack_params(params, act_dtype=jnp.bfloat16):
    """Pad each weight to (128,128) / bias to (1,128) and stack all layers.
    Done ONCE at init.  Weights -> bf16 MXU operands, biases -> act dtype."""
    w_stack = jnp.zeros((N_LAYERS, PAD, PAD), jnp.float32)
    b_stack = jnp.zeros((N_LAYERS, 1, PAD), jnp.float32)
    for i, (w, b) in enumerate(params):
        w_stack = w_stack.at[i, : w.shape[0], : w.shape[1]].set(w)
        b_stack = b_stack.at[i, 0, : b.shape[0]].set(b)
    return w_stack.astype(jnp.bfloat16), b_stack.astype(act_dtype)


@partial(jax.jit, static_argnames=("tb_max",))
def cactinet_forward(x, w_stack, b_stack, tb_max=1024):
    B = x.shape[0]
    tb, steps = _pick_tile(B, tb_max)

    flops = 2 * steps * tb * PAD * PAD * N_LAYERS
    bytes_accessed = (x.size * 4 + w_stack.size * 2
                      + b_stack.size * b_stack.dtype.itemsize + B * OUT_PAD * 4)

    out_pad = pl.pallas_call(
        mlp_kernel,
        out_shape=jax.ShapeDtypeStruct((B, OUT_PAD), jnp.float32),
        grid=(steps,),
        in_specs=[
            pl.BlockSpec((tb, IN_DIM), lambda i: (i, 0)),              # batch tiles stream
            pl.BlockSpec((N_LAYERS, PAD, PAD), lambda i: (0, 0, 0)),   # weights resident
            pl.BlockSpec((N_LAYERS, 1, PAD), lambda i: (0, 0, 0)),     # biases resident
        ],
        out_specs=pl.BlockSpec((tb, OUT_PAD), lambda i: (i, 0)),
        scratch_shapes=[pltpu.VMEM((tb, PAD), jnp.float32)],
        compiler_params=pltpu.CompilerParams(
            dimension_semantics=("parallel",)),
        cost_estimate=pl.CostEstimate(
            flops=flops, transcendentals=0, bytes_accessed=bytes_accessed),
    )(x.astype(jnp.float32), w_stack, b_stack)

    return out_pad[:, :OUT_DIM]


def cactinet_reference(x, params, act_dtype=None):
    """Pure-JAX reference.  act_dtype=None -> full-f32 PyTorch-equivalent math;
    otherwise mirrors the kernel exactly (bf16 matmul operands, f32 accum,
    bias-add + ReLU in act_dtype)."""
    h = x.astype(jnp.float32)
    for i, (w, b) in enumerate(params):
        if act_dtype is None:
            h = h @ w + b
            if i < N_LAYERS - 1:
                h = jnp.maximum(h, 0.0)
        else:
            acc = jnp.dot(h.astype(jnp.bfloat16), w.astype(jnp.bfloat16),
                          preferred_element_type=jnp.float32)
            if i < N_LAYERS - 1:
                h = jnp.maximum(acc.astype(act_dtype) + b.astype(act_dtype),
                                0).astype(jnp.float32)
            else:
                h = acc + b.astype(act_dtype).astype(jnp.float32)
    return h


if __name__ == "__main__":
    key = jax.random.PRNGKey(0)
    kx, kp = jax.random.split(key)

    batch = 8
    x = jax.random.normal(kx, (batch, IN_DIM), jnp.float32)
    params = init_params(kp)
    act_dtype = default_act_dtype()
    w_stack, b_stack = pad_and_stack_params(params, act_dtype)   # one-time pad/stack

    out = cactinet_forward(x, w_stack, b_stack)
    out = jax.block_until_ready(out)

    assert out.shape == (batch, OUT_DIM), out.shape

    # Tight check vs a reference using exactly the kernel's mixed-precision math.
    ref_match = cactinet_reference(x, params, act_dtype=act_dtype)
    assert jnp.allclose(out, ref_match, atol=2e-3, rtol=2e-3), \
        "mismatch vs matched-precision reference"

    # Looser sanity check vs the full-f32 PyTorch-equivalent forward.
    ref_f32 = cactinet_reference(x, params, act_dtype=None)
    assert jnp.allclose(out, ref_f32, atol=8e-2, rtol=8e-2), \
        "mismatch vs f32 reference"

    print("KERNEL_OK")
</pallas_src>

<mosaic_0001>
module attributes {stable_mosaic.version = 11 : i64} {
  func.func @mlp_kernel(%arg0: i32, %arg1: memref<8x11xf32, #tpu.memory_space<vmem>>, %arg2: memref<11x128x128xbf16, #tpu.memory_space<vmem>>, %arg3: memref<11x1x128xbf16, #tpu.memory_space<vmem>>, %arg4: memref<8x8xf32, #tpu.memory_space<vmem>>, %arg5: memref<8x128xf32, #tpu.memory_space<vmem>>) attributes {dimension_semantics = [#tpu.dimension_semantics<parallel>], iteration_bounds = array<i64: 1>, scalar_prefetch = 0 : i64, scratch_operands = 1 : i64, tpu.core_type = #tpu.core_type<tc>, window_params = [{transform_indices = @transform_0, window_bounds = array<i64: 8, 11>}, {pipeline_mode = #tpu.pipeline_mode<synchronous>, transform_indices = @transform_1, window_bounds = array<i64: 11, 128, 128>}, {pipeline_mode = #tpu.pipeline_mode<synchronous>, transform_indices = @transform_2, window_bounds = array<i64: 11, 1, 128>}, {transform_indices = @transform_3, window_bounds = array<i64: 8, 8>}]} {
    %cst = arith.constant 0.000000e+00 : f32
    %0 = vector.broadcast %cst : f32 to vector<8x128xf32>
    %c0 = arith.constant 0 : index
    %c0_0 = arith.constant 0 : index
    %1 = vector.load %arg5[%c0, %c0_0] : memref<8x128xf32, #tpu.memory_space<vmem>>, vector<8x128xf32>
    tpu.vector_store %arg5[%c0, %c0_0], %0 {strides = array<i32>} : memref<8x128xf32, #tpu.memory_space<vmem>>, vector<8x128xf32>,
    %c0_1 = arith.constant 0 : index
    %c0_2 = arith.constant 0 : index
    %2 = vector.load %arg1[%c0_1, %c0_2] : memref<8x11xf32, #tpu.memory_space<vmem>>, vector<8x11xf32>
    %c0_3 = arith.constant 0 : index
    %c0_4 = arith.constant 0 : index
    %3 = vector.load %arg5[%c0_3, %c0_4] : memref<8x128xf32, #tpu.memory_space<vmem>>, vector<8x11xf32>
    tpu.vector_store %arg5[%c0_3, %c0_4], %2 {strides = array<i32>} : memref<8x128xf32, #tpu.memory_space<vmem>>, vector<8x11xf32>,
    %c0_5 = arith.constant 0 : index
    %c0_6 = arith.constant 0 : index
    %4 = vector.load %arg5[%c0_5, %c0_6] : memref<8x128xf32, #tpu.memory_space<vmem>>, vector<8x128xf32>
    %5 = arith.truncf %4 : vector<8x128xf32> to vector<8x128xbf16>
    %c0_7 = arith.constant 0 : index
    %c0_8 = arith.constant 0 : index
    %c0_9 = arith.constant 0 : index
    %6 = vector.load %arg2[%c0_7, %c0_8, %c0_9] : memref<11x128x128xbf16, #tpu.memory_space<vmem>>, vector<1x128x128xbf16>
    %7 = vector.shape_cast %6 : vector<1x128x128xbf16> to vector<128x128xbf16>
    %cst_10 = arith.constant dense<0.000000e+00> : vector<8x128xf32>
    %8 = tpu.matmul %5, %7, %cst_10 {dimension_numbers = #tpu.dot_dimension_numbers<[1], [0], [0], [1], [0, 0, 1, 1], [], []>} : vector<8x128xbf16>, vector<128x128xbf16>, vector<8x128xf32> -> vector<8x128xf32>
    %9 = arith.truncf %8 : vector<8x128xf32> to vector<8x128xbf16>
    %c0_11 = arith.constant 0 : index
    %c0_12 = arith.constant 0 : index
    %c0_13 = arith.constant 0 : index
    %10 = vector.load %arg3[%c0_11, %c0_12, %c0_13] : memref<11x1x128xbf16, #tpu.memory_space<vmem>>, vector<1x1x128xbf16>
    %11 = vector.shape_cast %10 : vector<1x1x128xbf16> to vector<1x128xbf16>
    %12 = vector.broadcast %11 : vector<1x128xbf16> to vector<8x128xbf16>
    %13 = arith.addf %9, %12 : vector<8x128xbf16>
    %cst_14 = arith.constant 0.000000e+00 : bf16
    %14 = vector.broadcast %cst_14 : bf16 to vector<8x128xbf16>
    %15 = arith.maximumf %13, %14 : vector<8x128xbf16>
    %c1 = arith.constant 1 : index
    %c0_15 = arith.constant 0 : index
    %c0_16 = arith.constant 0 : index
    %16 = vector.load %arg2[%c1, %c0_15, %c0_16] : memref<11x128x128xbf16, #tpu.memory_space<vmem>>, vector<1x128x128xbf16>
    %17 = vector.shape_cast %16 : vector<1x128x128xbf16> to vector<128x128xbf16>
    %cst_17 = arith.constant dense<0.000000e+00> : vector<8x128xf32>
    %18 = tpu.matmul %15, %17, %cst_17 {dimension_numbers = #tpu.dot_dimension_numbers<[1], [0], [0], [1], [0, 0, 1, 1], [], []>} : vector<8x128xbf16>, vector<128x128xbf16>, vector<8x128xf32> -> vector<8x128xf32>
    %19 = arith.truncf %18 : vector<8x128xf32> to vector<8x128xbf16>
    %c1_18 = arith.constant 1 : index
    %c0_19 = arith.constant 0 : index
    %c0_20 = arith.constant 0 : index
    %20 = vector.load %arg3[%c1_18, %c0_19, %c0_20] : memref<11x1x128xbf16, #tpu.memory_space<vmem>>, vector<1x1x128xbf16>
    %21 = vector.shape_cast %20 : vector<1x1x128xbf16> to vector<1x128xbf16>
    %22 = vector.broadcast %21 : vector<1x128xbf16> to vector<8x128xbf16>
    %23 = arith.addf %19, %22 : vector<8x128xbf16>
    %cst_21 = arith.constant 0.000000e+00 : bf16
    %24 = vector.broadcast %cst_21 : bf16 to vector<8x128xbf16>
    %25 = arith.maximumf %23, %24 : vector<8x128xbf16>
    %c2 = arith.constant 2 : index
    %c0_22 = arith.constant 0 : index
    %c0_23 = arith.constant 0 : index
    %26 = vector.load %arg2[%c2, %c0_22, %c0_23] : memref<11x128x128xbf16, #tpu.memory_space<vmem>>, vector<1x128x128xbf16>
    %27 = vector.shape_cast %26 : vector<1x128x128xbf16> to vector<128x128xbf16>
    %cst_24 = arith.constant dense<0.000000e+00> : vector<8x128xf32>
    %28 = tpu.matmul %25, %27, %cst_24 {dimension_numbers = #tpu.dot_dimension_numbers<[1], [0], [0], [1], [0, 0, 1, 1], [], []>} : vector<8x128xbf16>, vector<128x128xbf16>, vector<8x128xf32> -> vector<8x128xf32>
    %29 = arith.truncf %28 : vector<8x128xf32> to vector<8x128xbf16>
    %c2_25 = arith.constant 2 : index
    %c0_26 = arith.constant 0 : index
    %c0_27 = arith.constant 0 : index
    %30 = vector.load %arg3[%c2_25, %c0_26, %c0_27] : memref<11x1x128xbf16, #tpu.memory_space<vmem>>, vector<1x1x128xbf16>
    %31 = vector.shape_cast %30 : vector<1x1x128xbf16> to vector<1x128xbf16>
    %32 = vector.broadcast %31 : vector<1x128xbf16> to vector<8x128xbf16>
    %33 = arith.addf %29, %32 : vector<8x128xbf16>
    %cst_28 = arith.constant 0.000000e+00 : bf16
    %34 = vector.broadcast %cst_28 : bf16 to vector<8x128xbf16>
    %35 = arith.maximumf %33, %34 : vector<8x128xbf16>
    %c3 = arith.constant 3 : index
    %c0_29 = arith.constant 0 : index
    %c0_30 = arith.constant 0 : index
    %36 = vector.load %arg2[%c3, %c0_29, %c0_30] : memref<11x128x128xbf16, #tpu.memory_space<vmem>>, vector<1x128x128xbf16>
    %37 = vector.shape_cast %36 : vector<1x128x128xbf16> to vector<128x128xbf16>
    %cst_31 = arith.constant dense<0.000000e+00> : vector<8x128xf32>
    %38 = tpu.matmul %35, %37, %cst_31 {dimension_numbers = #tpu.dot_dimension_numbers<[1], [0], [0], [1], [0, 0, 1, 1], [], []>} : vector<8x128xbf16>, vector<128x128xbf16>, vector<8x128xf32> -> vector<8x128xf32>
    %39 = arith.truncf %38 : vector<8x128xf32> to vector<8x128xbf16>
    %c3_32 = arith.constant 3 : index
    %c0_33 = arith.constant 0 : index
    %c0_34 = arith.constant 0 : index
    %40 = vector.load %arg3[%c3_32, %c0_33, %c0_34] : memref<11x1x128xbf16, #tpu.memory_space<vmem>>, vector<1x1x128xbf16>
    %41 = vector.shape_cast %40 : vector<1x1x128xbf16> to vector<1x128xbf16>
    %42 = vector.broadcast %41 : vector<1x128xbf16> to vector<8x128xbf16>
    %43 = arith.addf %39, %42 : vector<8x128xbf16>
    %cst_35 = arith.constant 0.000000e+00 : bf16
    %44 = vector.broadcast %cst_35 : bf16 to vector<8x128xbf16>
    %45 = arith.maximumf %43, %44 : vector<8x128xbf16>
    %c4 = arith.constant 4 : index
    %c0_36 = arith.constant 0 : index
    %c0_37 = arith.constant 0 : index
    %46 = vector.load %arg2[%c4, %c0_36, %c0_37] : memref<11x128x128xbf16, #tpu.memory_space<vmem>>, vector<1x128x128xbf16>
    %47 = vector.shape_cast %46 : vector<1x128x128xbf16> to vector<128x128xbf16>
    %cst_38 = arith.constant dense<0.000000e+00> : vector<8x128xf32>
    %48 = tpu.matmul %45, %47, %cst_38 {dimension_numbers = #tpu.dot_dimension_numbers<[1], [0], [0], [1], [0, 0, 1, 1], [], []>} : vector<8x128xbf16>, vector<128x128xbf16>, vector<8x128xf32> -> vector<8x128xf32>
    %49 = arith.truncf %48 : vector<8x128xf32> to vector<8x128xbf16>
    %c4_39 = arith.constant 4 : index
    %c0_40 = arith.constant 0 : index
    %c0_41 = arith.constant 0 : index
    %50 = vector.load %arg3[%c4_39, %c0_40, %c0_41] : memref<11x1x128xbf16, #tpu.memory_space<vmem>>, vector<1x1x128xbf16>
    %51 = vector.shape_cast %50 : vector<1x1x128xbf16> to vector<1x128xbf16>
    %52 = vector.broadcast %51 : vector<1x128xbf16> to vector<8x128xbf16>
    %53 = arith.addf %49, %52 : vector<8x128xbf16>
    %cst_42 = arith.constant 0.000000e+00 : bf16
    %54 = vector.broadcast %cst_42 : bf16 to vector<8x128xbf16>
    %55 = arith.maximumf %53, %54 : vector<8x128xbf16>
    %c5 = arith.constant 5 : index
    %c0_43 = arith.constant 0 : index
    %c0_44 = arith.constant 0 : index
    %56 = vector.load %arg2[%c5, %c0_43, %c0_44] : memref<11x128x128xbf16, #tpu.memory_space<vmem>>, vector<1x128x128xbf16>
    %57 = vector.shape_cast %56 : vector<1x128x128xbf16> to vector<128x128xbf16>
    %cst_45 = arith.constant dense<0.000000e+00> : vector<8x128xf32>
    %58 = tpu.matmul %55, %57, %cst_45 {dimension_numbers = #tpu.dot_dimension_numbers<[1], [0], [0], [1], [0, 0, 1, 1], [], []>} : vector<8x128xbf16>, vector<128x128xbf16>, vector<8x128xf32> -> vector<8x128xf32>
    %59 = arith.truncf %58 : vector<8x128xf32> to vector<8x128xbf16>
    %c5_46 = arith.constant 5 : index
    %c0_47 = arith.constant 0 : index
    %c0_48 = arith.constant 0 : index
    %60 = vector.load %arg3[%c5_46, %c0_47, %c0_48] : memref<11x1x128xbf16, #tpu.memory_space<vmem>>, vector<1x1x128xbf16>
    %61 = vector.shape_cast %60 : vector<1x1x128xbf16> to vector<1x128xbf16>
    %62 = vector.broadcast %61 : vector<1x128xbf16> to vector<8x128xbf16>
    %63 = arith.addf %59, %62 : vector<8x128xbf16>
    %cst_49 = arith.constant 0.000000e+00 : bf16
    %64 = vector.broadcast %cst_49 : bf16 to vector<8x128xbf16>
    %65 = arith.maximumf %63, %64 : vector<8x128xbf16>
    %c6 = arith.constant 6 : index
    %c0_50 = arith.constant 0 : index
    %c0_51 = arith.constant 0 : index
    %66 = vector.load %arg2[%c6, %c0_50, %c0_51] : memref<11x128x128xbf16, #tpu.memory_space<vmem>>, vector<1x128x128xbf16>
    %67 = vector.shape_cast %66 : vector<1x128x128xbf16> to vector<128x128xbf16>
    %cst_52 = arith.constant dense<0.000000e+00> : vector<8x128xf32>
    %68 = tpu.matmul %65, %67, %cst_52 {dimension_numbers = #tpu.dot_dimension_numbers<[1], [0], [0], [1], [0, 0, 1, 1], [], []>} : vector<8x128xbf16>, vector<128x128xbf16>, vector<8x128xf32> -> vector<8x128xf32>
    %69 = arith.truncf %68 : vector<8x128xf32> to vector<8x128xbf16>
    %c6_53 = arith.constant 6 : index
    %c0_54 = arith.constant 0 : index
    %c0_55 = arith.constant 0 : index
    %70 = vector.load %arg3[%c6_53, %c0_54, %c0_55] : memref<11x1x128xbf16, #tpu.memory_space<vmem>>, vector<1x1x128xbf16>
    %71 = vector.shape_cast %70 : vector<1x1x128xbf16> to vector<1x128xbf16>
    %72 = vector.broadcast %71 : vector<1x128xbf16> to vector<8x128xbf16>
    %73 = arith.addf %69, %72 : vector<8x128xbf16>
    %cst_56 = arith.constant 0.000000e+00 : bf16
    %74 = vector.broadcast %cst_56 : bf16 to vector<8x128xbf16>
    %75 = arith.maximumf %73, %74 : vector<8x128xbf16>
    %c7 = arith.constant 7 : index
    %c0_57 = arith.constant 0 : index
    %c0_58 = arith.constant 0 : index
    %76 = vector.load %arg2[%c7, %c0_57, %c0_58] : memref<11x128x128xbf16, #tpu.memory_space<vmem>>, vector<1x128x128xbf16>
    %77 = vector.shape_cast %76 : vector<1x128x128xbf16> to vector<128x128xbf16>
    %cst_59 = arith.constant dense<0.000000e+00> : vector<8x128xf32>
    %78 = tpu.matmul %75, %77, %cst_59 {dimension_numbers = #tpu.dot_dimension_numbers<[1], [0], [0], [1], [0, 0, 1, 1], [], []>} : vector<8x128xbf16>, vector<128x128xbf16>, vector<8x128xf32> -> vector<8x128xf32>
    %79 = arith.truncf %78 : vector<8x128xf32> to vector<8x128xbf16>
    %c7_60 = arith.constant 7 : index
    %c0_61 = arith.constant 0 : index
    %c0_62 = arith.constant 0 : index
    %80 = vector.load %arg3[%c7_60, %c0_61, %c0_62] : memref<11x1x128xbf16, #tpu.memory_space<vmem>>, vector<1x1x128xbf16>
    %81 = vector.shape_cast %80 : vector<1x1x128xbf16> to vector<1x128xbf16>
    %82 = vector.broadcast %81 : vector<1x128xbf16> to vector<8x128xbf16>
    %83 = arith.addf %79, %82 : vector<8x128xbf16>
    %cst_63 = arith.constant 0.000000e+00 : bf16
    %84 = vector.broadcast %cst_63 : bf16 to vector<8x128xbf16>
    %85 = arith.maximumf %83, %84 : vector<8x128xbf16>
    %c8 = arith.constant 8 : index
    %c0_64 = arith.constant 0 : index
    %c0_65 = arith.constant 0 : index
    %86 = vector.load %arg2[%c8, %c0_64, %c0_65] : memref<11x128x128xbf16, #tpu.memory_space<vmem>>, vector<1x128x128xbf16>
    %87 = vector.shape_cast %86 : vector<1x128x128xbf16> to vector<128x128xbf16>
    %cst_66 = arith.constant dense<0.000000e+00> : vector<8x128xf32>
    %88 = tpu.matmul %85, %87, %cst_66 {dimension_numbers = #tpu.dot_dimension_numbers<[1], [0], [0], [1], [0, 0, 1, 1], [], []>} : vector<8x128xbf16>, vector<128x128xbf16>, vector<8x128xf32> -> vector<8x128xf32>
    %89 = arith.truncf %88 : vector<8x128xf32> to vector<8x128xbf16>
    %c8_67 = arith.constant 8 : index
    %c0_68 = arith.constant 0 : index
    %c0_69 = arith.constant 0 : index
    %90 = vector.load %arg3[%c8_67, %c0_68, %c0_69] : memref<11x1x128xbf16, #tpu.memory_space<vmem>>, vector<1x1x128xbf16>
    %91 = vector.shape_cast %90 : vector<1x1x128xbf16> to vector<1x128xbf16>
    %92 = vector.broadcast %91 : vector<1x128xbf16> to vector<8x128xbf16>
    %93 = arith.addf %89, %92 : vector<8x128xbf16>
    %cst_70 = arith.constant 0.000000e+00 : bf16
    %94 = vector.broadcast %cst_70 : bf16 to vector<8x128xbf16>
    %95 = arith.maximumf %93, %94 : vector<8x128xbf16>
    %c9 = arith.constant 9 : index
    %c0_71 = arith.constant 0 : index
    %c0_72 = arith.constant 0 : index
    %96 = vector.load %arg2[%c9, %c0_71, %c0_72] : memref<11x128x128xbf16, #tpu.memory_space<vmem>>, vector<1x128x128xbf16>
    %97 = vector.shape_cast %96 : vector<1x128x128xbf16> to vector<128x128xbf16>
    %cst_73 = arith.constant dense<0.000000e+00> : vector<8x128xf32>
    %98 = tpu.matmul %95, %97, %cst_73 {dimension_numbers = #tpu.dot_dimension_numbers<[1], [0], [0], [1], [0, 0, 1, 1], [], []>} : vector<8x128xbf16>, vector<128x128xbf16>, vector<8x128xf32> -> vector<8x128xf32>
    %99 = arith.truncf %98 : vector<8x128xf32> to vector<8x128xbf16>
    %c9_74 = arith.constant 9 : index
    %c0_75 = arith.constant 0 : index
    %c0_76 = arith.constant 0 : index
    %100 = vector.load %arg3[%c9_74, %c0_75, %c0_76] : memref<11x1x128xbf16, #tpu.memory_space<vmem>>, vector<1x1x128xbf16>
    %101 = vector.shape_cast %100 : vector<1x1x128xbf16> to vector<1x128xbf16>
    %102 = vector.broadcast %101 : vector<1x128xbf16> to vector<8x128xbf16>
    %103 = arith.addf %99, %102 : vector<8x128xbf16>
    %cst_77 = arith.constant 0.000000e+00 : bf16
    %104 = vector.broadcast %cst_77 : bf16 to vector<8x128xbf16>
    %105 = arith.maximumf %103, %104 : vector<8x128xbf16>
    %c10 = arith.constant 10 : index
    %c0_78 = arith.constant 0 : index
    %c0_79 = arith.constant 0 : index
    %106 = vector.load %arg2[%c10, %c0_78, %c0_79] : memref<11x128x128xbf16, #tpu.memory_space<vmem>>, vector<1x128x128xbf16>
    %107 = vector.shape_cast %106 : vector<1x128x128xbf16> to vector<128x128xbf16>
    %cst_80 = arith.constant dense<0.000000e+00> : vector<8x128xf32>
    %108 = tpu.matmul %105, %107, %cst_80 {dimension_numbers = #tpu.dot_dimension_numbers<[1], [0], [0], [1], [0, 0, 1, 1], [], []>} : vector<8x128xbf16>, vector<128x128xbf16>, vector<8x128xf32> -> vector<8x128xf32>
    %c10_81 = arith.constant 10 : index
    %c0_82 = arith.constant 0 : index
    %c0_83 = arith.constant 0 : index
    %109 = vector.load %arg3[%c10_81, %c0_82, %c0_83] : memref<11x1x128xbf16, #tpu.memory_space<vmem>>, vector<1x1x128xbf16>
    %110 = vector.shape_cast %109 : vector<1x1x128xbf16> to vector<1x128xbf16>
    %111 = arith.extf %110 : vector<1x128xbf16> to vector<1x128xf32>
    %112 = vector.broadcast %111 : vector<1x128xf32> to vector<8x128xf32>
    %113 = arith.addf %108, %112 : vector<8x128xf32>
    %114 = vector.extract_strided_slice %113 {offsets = [0, 0], sizes = [8, 8], strides = [1, 1]} : vector<8x128xf32> to vector<8x8xf32>
    %c0_84 = arith.constant 0 : index
    %c0_85 = arith.constant 0 : index
    %115 = vector.load %arg4[%c0_84, %c0_85] : memref<8x8xf32, #tpu.memory_space<vmem>>, vector<8x8xf32>
    tpu.vector_store %arg4[%c0_84, %c0_85], %114 {strides = array<i32>} : memref<8x8xf32, #tpu.memory_space<vmem>>, vector<8x8xf32>,
    return
  }
  func.func @transform_0(%arg0: i32) -> (i32, i32) {
    %c0_i32 = arith.constant 0 : i32
    %c0_i32_0 = arith.constant 0 : i32
    return %arg0, %c0_i32 : i32, i32
  }
  func.func @transform_1(%arg0: i32) -> (i32, i32, i32) {
    %c0_i32 = arith.constant 0 : i32
    %c0_i32_0 = arith.constant 0 : i32
    %c0_i32_1 = arith.constant 0 : i32
    %c0_i32_2 = arith.constant 0 : i32
    return %c0_i32, %c0_i32_0, %c0_i32_1 : i32, i32, i32
  }
  func.func @transform_2(%arg0: i32) -> (i32, i32, i32) {
    %c0_i32 = arith.constant 0 : i32
    %c0_i32_0 = arith.constant 0 : i32
    %c0_i32_1 = arith.constant 0 : i32
    %c0_i32_2 = arith.constant 0 : i32
    return %c0_i32, %c0_i32_0, %c0_i32_1 : i32, i32, i32
  }
  func.func @transform_3(%arg0: i32) -> (i32, i32) {
    %c0_i32 = arith.constant 0 : i32
    %c0_i32_0 = arith.constant 0 : i32
    return %arg0, %c0_i32 : i32, i32
  }
}

</mosaic_0001>

<bundles_post_ra>
// kernel: cactinet_forward.1
= control target key start
LH: loop header
LB: loop body
LE: loop exit
PB: predicated region body
PF: predicated region fallthrough
CT: control target
= control target key end

     0   :  { %8 = vsyncpa [#allocation4], 0  ;;  %s1630_s0 = inlined_call_operand.vmem [shape: f32[8,11], index: 0, kind: input, shape index: {}]   ;;  %s1631_s1 = inlined_call_operand.hbm [shape: bf16[11,128,128], index: 1, kind: input, shape index: {}]   ;;  %s1632_s2 = inlined_call_operand.vmem [shape: bf16[11,1,128], index: 2, kind: input, shape index: {}]   ;;  %s1633_s3 = inlined_call_operand.hbm [shape: f32[8,8], index: 3, kind: output, shape index: {}]  }
   0x1   :  { %9 = vsyncpa [#allocation5], 0  ;;  %s16_s14 = sshll.u32 %s1631_s1, 4  ;;  %s1563_s15 = smov [#allocation3]   ;;  %s17_s14 = int_to_ptr.hbm [resolvable:$true] %s16_s14 }
   0x2   :  { %s18_s16 = sshll.u32 %s1563_s15, 4  ;;  %s1564_s17 = smov 64   ;;  %s19_s16 = int_to_ptr.vmem [resolvable:$true] %s18_s16 }
   0x3   :  { %s1565_s18 = smov 4  }
   0x4   :  { %24 = dma.hbm_to_vmem [thread:$0]  %s17_s14, 11264, %s19_s16, [#allocation4], %s1564_s17, %s1564_s17, %s1565_s18  }
   0x5   :  { %1559 = dma.done.wait [#allocation4], 11264  }
   0x6   :  { %1560 = vsyncadd [#allocation4], 4294956032  ;;  %v1566_v0 = vmov 0.0   ;;  %v1425_v1 = vld [vmem:[#allocation3 + $0x38] sm:$0xff]  ;;  %vm33_vm0 = vcmask 89088   ;;  %v1424_v2 = vld [vmem:[#allocation3 + $0x30] sm:$0xff] }
   0x7   :  { %31 = vst [vmem:[#allocation2] sm:$0xff] %v1566_v0  ;;  %101 = vmatpush.bf16.msra.mxu0 %v1425_v1  ;;  %v32_v3 = vld [vmem:[%s1630_s0] sm:$0xff]  ;;  %v1432_v5 = vld [vmem:[#allocation3 + $0x70] sm:$0xff]  ;;  %v1423_v6 = vld [vmem:[#allocation3 + $0x28] sm:$0xff]  ;;  %s1567_s14 = smov [#allocation6]   ;;  %s1046_s18 = sshll.u32 %s1633_s3, 4  ;;  %s1047_s18 = int_to_ptr.hbm [resolvable:$true] %s1046_s18 }
   0x8   :  { %34 = vst.msk [vmem:[#allocation2] sm:$0xff] %vm33_vm0, %v32_v3  ;;  %v1433_v4 = vld [vmem:[#allocation3 + $0x78] sm:$0xff]  ;;  %v1431_v7 = vld [vmem:[#allocation3 + $0x68] sm:$0xff]  ;;  %v1422_v8 = vld [vmem:[#allocation3 + $0x20] sm:$0xff]  ;;  %s1044_s15 = sshll.u32 %s1567_s14, 4  ;;  %vm1037_vm1 = vcmask 64512   ;;  %s1045_s15 = int_to_ptr.vmem [resolvable:$true] %s1044_s15 }
   0x9   :  { %192 = vmatpush.bf16.msra.mxu1 %v1433_v4  ;;  %v1430_v9 = vld [vmem:[#allocation3 + $0x60] sm:$0xff]  ;;  %v1421_v10 = vld [vmem:[#allocation3 + $0x18] sm:$0xff]  ;;  %v1420_v12 = vld [vmem:[#allocation3 + $0x10] sm:$0xff] }
   0xa   :  { %v1429_v11 = vld [vmem:[#allocation3 + $0x58] sm:$0xff]  ;;  %v1419_v13 = vld [vmem:[#allocation3 + $0x8] sm:$0xff]  ;;  %v1418_v14 = vld [vmem:[#allocation3] sm:$0xff] }
   0xb   :  { %102 = vmatpush.bf16.msra.mxu0 %v1424_v2  ;;  %v1428_v17 = vld [vmem:[#allocation3 + $0x50] sm:$0xff]  ;;  %v1427_v18 = vld [vmem:[#allocation3 + $0x48] sm:$0xff]  ;;  %v1426_v19 = vld [vmem:[#allocation3 + $0x40] sm:$0xff] }
   0xc   :  { %v1441_v20 = vld [vmem:[#allocation3 + $0xb8] sm:$0xff]  ;;  %v1440_v21 = vld [vmem:[#allocation3 + $0xb0] sm:$0xff]  ;;  %v1439_v22 = vld [vmem:[#allocation3 + $0xa8] sm:$0xff] }
   0xd   :  { %193 = vmatpush.bf16.msra.mxu1 %v1432_v5  ;;  %284 = vmatpush.bf16.msra.mxu2 %v1441_v20  ;;  %v1438_v23 = vld [vmem:[#allocation3 + $0xa0] sm:$0xff]  ;;  %v115_v24 = vld [vmem:[%s1632_s2] sm:$0x1]  ;;  %v1436_v36 = vld [vmem:[#allocation3 + $0x90] sm:$0xff] }
   0xe   :  { %v117_v25 = vpack.i.b16 %v115_v24, %v115_v24  ;;  %v1437_v26 = vld [vmem:[#allocation3 + $0x98] sm:$0xff]  ;;  %v1435_v37 = vld [vmem:[#allocation3 + $0x88] sm:$0xff]  ;;  %v1434_v38 = vld [vmem:[#allocation3 + $0x80] sm:$0xff] }
   0xf   :  { %103 = vmatpush.bf16.msra.mxu0 %v1423_v6  ;;  %v35_v15 = vld [vmem:[#allocation2] sm:$0xff]  ;;  %v1448_v40 = vld [vmem:[#allocation3 + $0xf0] sm:$0xff]  ;;  %v1447_v41 = vld [vmem:[#allocation3 + $0xe8] sm:$0xff] }
  0x10   :  { %v36_v16 = vpack.c.bf16 %v35_v15, %v35_v15  ;;  %v119_v27 = vperm.slane %v117_v25, 0  ;;  %v1449_v39 = vld [vmem:[#allocation3 + $0xf8] sm:$0xff]  ;;  %v1446_v42 = vld [vmem:[#allocation3 + $0xe0] sm:$0xff]  ;;  %v1444_v55 = vld [vmem:[#allocation3 + $0xd0] sm:$0xff] }
  0x11   :  { %194 = vmatpush.bf16.msra.mxu1 %v1431_v7  ;;  %285 = vmatpush.bf16.msra.mxu2 %v1440_v21  ;;  %v1120_v43 = vld [vmem:[%s1632_s2 + $0x1] sm:$0x1]  ;;  %v1443_v56 = vld [vmem:[#allocation3 + $0xc8] sm:$0xff]  ;;  %v1442_v57 = vld [vmem:[#allocation3 + $0xc0] sm:$0xff] }
  0x12   :  { %v121_v30 = vunpack.c.l.bf16 %v119_v27  ;;  %376 = vmatpush.bf16.msra.mxu3 %v1449_v39  ;;  %v209_v44 = vpack.i.b16 %v1120_v43, %v1120_v43  ;;  %v1445_v45 = vld [vmem:[#allocation3 + $0xd8] sm:$0xff]  ;;  %v1456_v59 = vld [vmem:[#allocation3 + $0x130] sm:$0xff]  ;;  %v1455_v60 = vld [vmem:[#allocation3 + $0x128] sm:$0xff] }
  0x13   :  { %104 = vmatpush.bf16.msra.mxu0 %v1422_v8  ;;  %v1457_v58 = vld [vmem:[#allocation3 + $0x138] sm:$0xff]  ;;  %v1454_v61 = vld [vmem:[#allocation3 + $0x120] sm:$0xff]  ;;  %v1463_v15 = vld [vmem:[#allocation3 + $0x168] sm:$0xff] }
  0x14   :  { %v211_v46 = vperm.slane %v209_v44, 0  ;;  %v1153_v62 = vld [vmem:[%s1632_s2 + $0x2] sm:$0x1] }
  0x15   :  { %195 = vmatpush.bf16.msra.mxu1 %v1430_v9  ;;  %286 = vmatpush.bf16.msra.mxu2 %v1439_v22  ;;  %v301_v63 = vpack.i.b16 %v1153_v62, %v1153_v62  ;;  %v1453_v0 = vld [vmem:[#allocation3 + $0x118] sm:$0xff] }
  0x16   :  { %377 = vmatpush.bf16.msra.mxu3 %v1448_v40  ;;  %v213_v49 = vunpack.c.l.bf16 %v211_v46 }
  0x17   :  { %105 = vmatpush.bf16.msra.mxu0 %v1421_v10  ;;  %v303_v1 = vperm.slane %v301_v63, 0  ;;  %v1452_v10 = vld [vmem:[#allocation3 + $0x110] sm:$0xff] }
  0x19   :  { %196 = vmatpush.bf16.msra.mxu1 %v1429_v11  ;;  %287 = vmatpush.bf16.msra.mxu2 %v1438_v23  ;;  %v305_v4 = vunpack.c.l.bf16 %v303_v1  ;;  %v1451_v11 = vld [vmem:[#allocation3 + $0x108] sm:$0xff] }
  0x1a   :  { %378 = vmatpush.bf16.msra.mxu3 %v1447_v41 }
  0x1b   :  { %106 = vmatpush.bf16.msra.mxu0 %v1420_v12  ;;  %v1450_v12 = vld [vmem:[#allocation3 + $0x100] sm:$0xff] }
  0x1d   :  { %197 = vmatpush.bf16.msra.mxu1 %v1428_v17  ;;  %288 = vmatpush.bf16.msra.mxu2 %v1437_v26  ;;  %v1186_v17 = vld [vmem:[%s1632_s2 + $0x3] sm:$0x1] }
  0x1e   :  { %379 = vmatpush.bf16.msra.mxu3 %v1446_v42 }
  0x1f   :  { %107 = vmatpush.bf16.msra.mxu0 %v1419_v13  ;;  %v1465_v13 = vld [vmem:[#allocation3 + $0x178] sm:$0xff] }
  0x21   :  { %198 = vmatpush.bf16.msra.mxu1 %v1427_v18  ;;  %289 = vmatpush.bf16.msra.mxu2 %v1436_v36  ;;  %v393_v18 = vpack.i.b16 %v1186_v17, %v1186_v17  ;;  %v1219_v36 = vld [vmem:[%s1632_s2 + $0x4] sm:$0x1] }
  0x22   :  { %380 = vmatpush.bf16.msra.mxu3 %v1445_v45 }
  0x23   :  { %108 = vmatpush.bf16.msra.mxu0 %v1418_v14  ;;  %v1464_v14 = vld [vmem:[#allocation3 + $0x170] sm:$0xff]  ;;  %v395_v20 = vperm.slane %v393_v18, 0 }
  0x25   :  { %199 = vmatpush.bf16.msra.mxu1 %v1426_v19  ;;  %290 = vmatpush.bf16.msra.mxu2 %v1435_v37  ;;  %v1461_v19 = vld [vmem:[#allocation3 + $0x158] sm:$0xff]  ;;  %v397_v23 = vunpack.c.l.bf16 %v395_v20  ;;  %v485_v37 = vpack.i.b16 %v1219_v36, %v1219_v36 }
  0x26   :  { %109 = vmatmul.bf16.vlgmr.msra.gmra.mxu0 %v36_v16  ;;  %381 = vmatpush.bf16.msra.mxu3 %v1444_v55  ;;  %v1462_v16 = vld [vmem:[#allocation3 + $0x160] sm:$0xff]  ;;  %v1252_v55 = vld [vmem:[%s1632_s2 + $0x5] sm:$0x1] }
  0x27   :  { %468 = vmatpush.bf16.msrb.mxu0 %v1457_v58  ;;  %v487_v39 = vperm.slane %v485_v37, 0 }
  0x29   :  { %291 = vmatpush.bf16.msra.mxu2 %v1434_v38  ;;  %560 = vmatpush.bf16.msrb.mxu1 %v1465_v13  ;;  %v1469_v38 = vld [vmem:[#allocation3 + $0x198] sm:$0xff]  ;;  %v489_v42 = vunpack.c.l.bf16 %v487_v39 }
  0x2a   :  { %382 = vmatpush.bf16.msra.mxu3 %v1443_v56  ;;  %v577_v56 = vpack.i.b16 %v1252_v55, %v1252_v55 }
  0x2b   :  { %469 = vmatpush.bf16.msrb.mxu0 %v1456_v59 }
  0x2c   :  { %v579_v58 = vperm.slane %v577_v56, 0 }
  0x2d   :  { %561 = vmatpush.bf16.msrb.mxu1 %v1464_v14 }
  0x2e   :  { %383 = vmatpush.bf16.msra.mxu3 %v1442_v57  ;;  %v1477_v57 = vld [vmem:[#allocation3 + $0x1d8] sm:$0xff] }
  0x2f   :  { %470 = vmatpush.bf16.msrb.mxu0 %v1455_v60 }
  0x31   :  { %562 = vmatpush.bf16.msrb.mxu1 %v1463_v15 }
  0x33   :  { %471 = vmatpush.bf16.msrb.mxu0 %v1454_v61  ;;  %v581_v61 = vunpack.c.l.bf16 %v579_v58 }
  0x35   :  { %563 = vmatpush.bf16.msrb.mxu1 %v1462_v16 }
  0x37   :  { %472 = vmatpush.bf16.msrb.mxu0 %v1453_v0 }
  0x39   :  { %564 = vmatpush.bf16.msrb.mxu1 %v1461_v19 }
  0x3b   :  { %473 = vmatpush.bf16.msrb.mxu0 %v1452_v10  ;;  %v1285_v10 = vld [vmem:[%s1632_s2 + $0x6] sm:$0x1] }
  0x3f   :  { %474 = vmatpush.bf16.msrb.mxu0 %v1451_v11  ;;  %v669_v11 = vpack.i.b16 %v1285_v10, %v1285_v10  ;;  %v1385_v10 = vld [vmem:[%s1632_s2 + $0xa] sm:$0x1] }
  0x41   :  { %v671_v13 = vperm.slane %v669_v11, 0  ;;  %v974_v11 = vunpack.c.l.bf16 %v1385_v10 }
  0x43   :  { %475 = vmatpush.bf16.msrb.mxu0 %v1450_v12  ;;  %v1485_v12 = vld [vmem:[#allocation3 + $0x218] sm:$0xff]  ;;  %v673_v16 = vunpack.c.l.bf16 %v671_v13 }
  0xa3   :  { %v110_v28 = vpop.f32.mrf.mxu0 }
  0xa4   :  { %v114_v29 = vpack.c.bf16 %v110_v28, %v110_v28 }
  0xa6   :  { %v120_v31 = vunpack.c.l.bf16 %v114_v29  ;;  %v1460_v29 = vld [vmem:[#allocation3 + $0x150] sm:$0xff] }
  0xa7   :  { %565 = vmatpush.bf16.msrb.mxu1 %v1460_v29  ;;  %v1318_v29 = vld [vmem:[%s1632_s2 + $0x7] sm:$0x1] }
  0xa8   :  { %v122_v32 = vadd.f32 %v121_v30, %v120_v31  ;;  %v1459_v30 = vld [vmem:[#allocation3 + $0x148] sm:$0xff]  ;;  %v1458_v31 = vld [vmem:[#allocation3 + $0x140] sm:$0xff] }
  0xaa   :  { %v125_v33 = vmax.f32 %v122_v32, 0.0  ;;  %v1473_v32 = vld [vmem:[#allocation3 + $0x1b8] sm:$0xff] }
  0xab   :  { %v112_v34 = vpop.f32.mrf.mxu0  ;;  %566 = vmatpush.bf16.msrb.mxu1 %v1459_v30  ;;  %652 = vmatpush.bf16.msrb.mxu2 %v1473_v32  ;;  %v761_v30 = vpack.i.b16 %v1318_v29, %v1318_v29 }
  0xac   :  { %v126_v35 = vpack.c.bf16 %v125_v33, %v125_v33  ;;  %v1472_v33 = vld [vmem:[#allocation3 + $0x1b0] sm:$0xff]  ;;  %v1471_v34 = vld [vmem:[#allocation3 + $0x1a8] sm:$0xff] }
  0xad   :  { %v763_v32 = vperm.slane %v761_v30, 0 }
  0xae   :  { %200 = vmatmul.bf16.vlgmr.msra.gmra.mxu1 %v126_v35  ;;  %v1470_v35 = vld [vmem:[#allocation3 + $0x1a0] sm:$0xff] }
  0xaf   :  { %567 = vmatpush.bf16.msrb.mxu1 %v1458_v31  ;;  %653 = vmatpush.bf16.msrb.mxu2 %v1472_v33  ;;  %v1493_v31 = vld [vmem:[#allocation3 + $0x258] sm:$0xff] }
  0xb3   :  { %654 = vmatpush.bf16.msrb.mxu2 %v1471_v34 }
  0xb7   :  { %655 = vmatpush.bf16.msrb.mxu2 %v1470_v35  ;;  %v765_v35 = vunpack.c.l.bf16 %v763_v32 }
  0xbb   :  { %656 = vmatpush.bf16.msrb.mxu2 %v1469_v38 }
 0x12b   :  { %v201_v47 = vpop.f32.mrf.mxu1 }
 0x12c   :  { %v205_v48 = vpack.c.bf16 %v201_v47, %v201_v47 }
 0x12e   :  { %v212_v50 = vunpack.c.l.bf16 %v205_v48  ;;  %v1468_v48 = vld [vmem:[#allocation3 + $0x190] sm:$0xff] }
 0x12f   :  { %657 = vmatpush.bf16.msrb.mxu2 %v1468_v48  ;;  %v1351_v48 = vld [vmem:[%s1632_s2 + $0x8] sm:$0x1] }
 0x130   :  { %v214_v51 = vadd.f32 %v213_v49, %v212_v50  ;;  %v1467_v49 = vld [vmem:[#allocation3 + $0x188] sm:$0xff]  ;;  %v1466_v50 = vld [vmem:[#allocation3 + $0x180] sm:$0xff] }
 0x132   :  { %v217_v52 = vmax.f32 %v214_v51, 0.0  ;;  %v1481_v51 = vld [vmem:[#allocation3 + $0x1f8] sm:$0xff] }
 0x133   :  { %v203_v53 = vpop.f32.mrf.mxu1  ;;  %658 = vmatpush.bf16.msrb.mxu2 %v1467_v49  ;;  %744 = vmatpush.bf16.msrb.mxu3 %v1481_v51  ;;  %v853_v49 = vpack.i.b16 %v1351_v48, %v1351_v48 }
 0x134   :  { %v218_v54 = vpack.c.bf16 %v217_v52, %v217_v52  ;;  %v1480_v52 = vld [vmem:[#allocation3 + $0x1f0] sm:$0xff]  ;;  %v1479_v53 = vld [vmem:[#allocation3 + $0x1e8] sm:$0xff] }
 0x135   :  { %v855_v51 = vperm.slane %v853_v49, 0 }
 0x136   :  { %292 = vmatmul.bf16.vlgmr.msra.gmra.mxu2 %v218_v54  ;;  %v1478_v54 = vld [vmem:[#allocation3 + $0x1e0] sm:$0xff] }
 0x137   :  { %659 = vmatpush.bf16.msrb.mxu2 %v1466_v50  ;;  %745 = vmatpush.bf16.msrb.mxu3 %v1480_v52  ;;  %v1501_v50 = vld [vmem:[#allocation3 + $0x298] sm:$0xff] }
 0x13b   :  { %746 = vmatpush.bf16.msrb.mxu3 %v1479_v53 }
 0x13f   :  { %747 = vmatpush.bf16.msrb.mxu3 %v1478_v54  ;;  %v857_v54 = vunpack.c.l.bf16 %v855_v51 }
 0x143   :  { %748 = vmatpush.bf16.msrb.mxu3 %v1477_v57 }
 0x1b9   :  { %v293_v2 = vpop.f32.mrf.mxu2 }
 0x1ba   :  { %v297_v3 = vpack.c.bf16 %v293_v2, %v293_v2 }
 0x1bc   :  { %v304_v5 = vunpack.c.l.bf16 %v297_v3  ;;  %v1476_v3 = vld [vmem:[#allocation3 + $0x1d0] sm:$0xff] }
 0x1bd   :  { %749 = vmatpush.bf16.msrb.mxu3 %v1476_v3 }
 0x1be   :  { %v306_v6 = vadd.f32 %v305_v4, %v304_v5  ;;  %v1475_v4 = vld [vmem:[#allocation3 + $0x1c8] sm:$0xff]  ;;  %v1474_v5 = vld [vmem:[#allocation3 + $0x1c0] sm:$0xff] }
 0x1c0   :  { %v309_v7 = vmax.f32 %v306_v6, 0.0  ;;  %v1489_v6 = vld [vmem:[#allocation3 + $0x238] sm:$0xff] }
 0x1c1   :  { %v295_v8 = vpop.f32.mrf.mxu2  ;;  %750 = vmatpush.bf16.msrb.mxu3 %v1475_v4  ;;  %836 = vmatpush.bf16.msra.mxu0 %v1489_v6 }
 0x1c2   :  { %v310_v9 = vpack.c.bf16 %v309_v7, %v309_v7  ;;  %v1488_v7 = vld [vmem:[#allocation3 + $0x230] sm:$0xff]  ;;  %v1487_v8 = vld [vmem:[#allocation3 + $0x228] sm:$0xff] }
 0x1c4   :  { %384 = vmatmul.bf16.vlgmr.msra.gmra.mxu3 %v310_v9  ;;  %v1486_v9 = vld [vmem:[#allocation3 + $0x220] sm:$0xff] }
 0x1c5   :  { %751 = vmatpush.bf16.msrb.mxu3 %v1474_v5  ;;  %837 = vmatpush.bf16.msra.mxu0 %v1488_v7 }
 0x1c9   :  { %838 = vmatpush.bf16.msra.mxu0 %v1487_v8 }
 0x1cd   :  { %839 = vmatpush.bf16.msra.mxu0 %v1486_v9 }
 0x1d1   :  { %840 = vmatpush.bf16.msra.mxu0 %v1485_v12  ;;  %v975_v12 = vperm.slane %v974_v11, 0 }
 0x247   :  { %v385_v21 = vpop.f32.mrf.mxu3 }
 0x248   :  { %v389_v22 = vpack.c.bf16 %v385_v21, %v385_v21 }
 0x24a   :  { %v396_v24 = vunpack.c.l.bf16 %v389_v22  ;;  %v1484_v22 = vld [vmem:[#allocation3 + $0x210] sm:$0xff] }
 0x24b   :  { %841 = vmatpush.bf16.msra.mxu0 %v1484_v22 }
 0x24c   :  { %v398_v25 = vadd.f32 %v397_v23, %v396_v24  ;;  %v1483_v23 = vld [vmem:[#allocation3 + $0x208] sm:$0xff]  ;;  %v1482_v24 = vld [vmem:[#allocation3 + $0x200] sm:$0xff] }
 0x24e   :  { %v401_v26 = vmax.f32 %v398_v25, 0.0  ;;  %v1497_v25 = vld [vmem:[#allocation3 + $0x278] sm:$0xff] }
 0x24f   :  { %v387_v27 = vpop.f32.mrf.mxu3  ;;  %842 = vmatpush.bf16.msra.mxu0 %v1483_v23  ;;  %928 = vmatpush.bf16.msra.mxu1 %v1497_v25 }
 0x250   :  { %v402_v28 = vpack.c.bf16 %v401_v26, %v401_v26  ;;  %v1496_v26 = vld [vmem:[#allocation3 + $0x270] sm:$0xff]  ;;  %v1495_v27 = vld [vmem:[#allocation3 + $0x268] sm:$0xff] }
 0x252   :  { %476 = vmatmul.bf16.vlgmr.msrb.gmra.mxu0 %v402_v28  ;;  %v1494_v28 = vld [vmem:[#allocation3 + $0x260] sm:$0xff] }
 0x253   :  { %843 = vmatpush.bf16.msra.mxu0 %v1482_v24  ;;  %929 = vmatpush.bf16.msra.mxu1 %v1496_v26 }
 0x257   :  { %930 = vmatpush.bf16.msra.mxu1 %v1495_v27 }
 0x25b   :  { %931 = vmatpush.bf16.msra.mxu1 %v1494_v28 }
 0x25f   :  { %932 = vmatpush.bf16.msra.mxu1 %v1493_v31 }
 0x2cf   :  { %v477_v40 = vpop.f32.mrf.mxu0 }
 0x2d0   :  { %v481_v41 = vpack.c.bf16 %v477_v40, %v477_v40 }
 0x2d2   :  { %v488_v43 = vunpack.c.l.bf16 %v481_v41  ;;  %v1492_v41 = vld [vmem:[#allocation3 + $0x250] sm:$0xff] }
 0x2d3   :  { %933 = vmatpush.bf16.msra.mxu1 %v1492_v41 }
 0x2d4   :  { %v490_v44 = vadd.f32 %v489_v42, %v488_v43  ;;  %v1491_v42 = vld [vmem:[#allocation3 + $0x248] sm:$0xff]  ;;  %v1490_v43 = vld [vmem:[#allocation3 + $0x240] sm:$0xff] }
 0x2d6   :  { %v493_v45 = vmax.f32 %v490_v44, 0.0  ;;  %v1505_v44 = vld [vmem:[#allocation3 + $0x2b8] sm:$0xff] }
 0x2d7   :  { %v479_v46 = vpop.f32.mrf.mxu0  ;;  %934 = vmatpush.bf16.msra.mxu1 %v1491_v42  ;;  %1024 = vmatpush.bf16.msra.mxu2 %v1505_v44 }
 0x2d8   :  { %v494_v47 = vpack.c.bf16 %v493_v45, %v493_v45  ;;  %v1504_v45 = vld [vmem:[#allocation3 + $0x2b0] sm:$0xff]  ;;  %v1503_v46 = vld [vmem:[#allocation3 + $0x2a8] sm:$0xff] }
 0x2da   :  { %568 = vmatmul.bf16.vlgmr.msrb.gmra.mxu1 %v494_v47  ;;  %v1502_v47 = vld [vmem:[#allocation3 + $0x2a0] sm:$0xff] }
 0x2db   :  { %935 = vmatpush.bf16.msra.mxu1 %v1490_v43  ;;  %1025 = vmatpush.bf16.msra.mxu2 %v1504_v45 }
 0x2df   :  { %1026 = vmatpush.bf16.msra.mxu2 %v1503_v46 }
 0x2e3   :  { %1027 = vmatpush.bf16.msra.mxu2 %v1502_v47 }
 0x2e7   :  { %1028 = vmatpush.bf16.msra.mxu2 %v1501_v50 }
 0x357   :  { %v569_v59 = vpop.f32.mrf.mxu1 }
 0x358   :  { %v573_v60 = vpack.c.bf16 %v569_v59, %v569_v59 }
 0x35a   :  { %v580_v62 = vunpack.c.l.bf16 %v573_v60  ;;  %v1500_v60 = vld [vmem:[#allocation3 + $0x290] sm:$0xff] }
 0x35b   :  { %1029 = vmatpush.bf16.msra.mxu2 %v1500_v60 }
 0x35c   :  { %v582_v63 = vadd.f32 %v581_v61, %v580_v62  ;;  %v1499_v61 = vld [vmem:[#allocation3 + $0x288] sm:$0xff]  ;;  %v1498_v62 = vld [vmem:[#allocation3 + $0x280] sm:$0xff] }
 0x35e   :  { %v585_v0 = vmax.f32 %v582_v63, 0.0  ;;  %v1384_v63 = vld [vmem:[%s1632_s2 + $0x9] sm:$0x1] }
 0x35f   :  { %v571_v1 = vpop.f32.mrf.mxu1  ;;  %1030 = vmatpush.bf16.msra.mxu2 %v1499_v61 }
 0x360   :  { %v586_v2 = vpack.c.bf16 %v585_v0, %v585_v0  ;;  %v945_v0 = vpack.i.b16 %v1384_v63, %v1384_v63 }
 0x362   :  { %660 = vmatmul.bf16.vlgmr.msrb.gmra.mxu2 %v586_v2  ;;  %v947_v1 = vperm.slane %v945_v0, 0 }
 0x363   :  { %1031 = vmatpush.bf16.msra.mxu2 %v1498_v62 }
 0x364   :  { %v949_v4 = vunpack.c.l.bf16 %v947_v1 }
 0x3e5   :  { %v661_v14 = vpop.f32.mrf.mxu2 }
 0x3e6   :  { %v665_v15 = vpack.c.bf16 %v661_v14, %v661_v14 }
 0x3e8   :  { %v672_v17 = vunpack.c.l.bf16 %v665_v15 }
 0x3ea   :  { %v674_v18 = vadd.f32 %v673_v16, %v672_v17 }
 0x3ec   :  { %v677_v19 = vmax.f32 %v674_v18, 0.0 }
 0x3ed   :  { %v663_v20 = vpop.f32.mrf.mxu2 }
 0x3ee   :  { %v678_v21 = vpack.c.bf16 %v677_v19, %v677_v19 }
 0x3f0   :  { %752 = vmatmul.bf16.vlgmr.msrb.gmra.mxu3 %v678_v21 }
 0x473   :  { %v753_v33 = vpop.f32.mrf.mxu3 }
 0x474   :  { %v757_v34 = vpack.c.bf16 %v753_v33, %v753_v33 }
 0x476   :  { %v764_v36 = vunpack.c.l.bf16 %v757_v34 }
 0x478   :  { %v766_v37 = vadd.f32 %v765_v35, %v764_v36 }
 0x47a   :  { %v769_v38 = vmax.f32 %v766_v37, 0.0 }
 0x47b   :  { %v755_v39 = vpop.f32.mrf.mxu3 }
 0x47c   :  { %v770_v40 = vpack.c.bf16 %v769_v38, %v769_v38 }
 0x47e   :  { %844 = vmatmul.bf16.vlgmr.msra.gmra.mxu0 %v770_v40 }
 0x4fb   :  { %v845_v52 = vpop.f32.mrf.mxu0 }
 0x4fc   :  { %v849_v53 = vpack.c.bf16 %v845_v52, %v845_v52 }
 0x4fe   :  { %v856_v55 = vunpack.c.l.bf16 %v849_v53 }
 0x500   :  { %v858_v56 = vadd.f32 %v857_v54, %v856_v55 }
 0x502   :  { %v861_v57 = vmax.f32 %v858_v56, 0.0 }
 0x503   :  { %v847_v58 = vpop.f32.mrf.mxu0 }
 0x504   :  { %v862_v59 = vpack.c.bf16 %v861_v57, %v861_v57 }
 0x506   :  { %936 = vmatmul.bf16.vlgmr.msra.gmra.mxu1 %v862_v59 }
 0x583   :  { %v937_v2 = vpop.f32.mrf.mxu1 }
 0x584   :  { %v941_v3 = vpack.c.bf16 %v937_v2, %v937_v2 }
 0x586   :  { %v948_v5 = vunpack.c.l.bf16 %v941_v3 }
 0x588   :  { %v950_v6 = vadd.f32 %v949_v4, %v948_v5 }
 0x58a   :  { %v953_v7 = vmax.f32 %v950_v6, 0.0 }
 0x58b   :  { %v939_v8 = vpop.f32.mrf.mxu1 }
 0x58c   :  { %v954_v9 = vpack.c.bf16 %v953_v7, %v953_v7 }
 0x58e   :  { %1032 = vmatmul.bf16.vlgmr.msra.gmra.mxu2 %v954_v9 }
 0x611   :  { %v1033_v13 = vpop.f32.mrf.mxu2 }
 0x612   :  { %v1034_v14 = vadd.f32 %v1033_v13, %v975_v12 }
 0x614   :  { %1038 = vst.msk [vmem:[#allocation6] sm:$0xff] %vm1037_vm1, %v1034_v14 }
 0x615   :  { %1049 = dma.vmem_to_hbm [thread:$0]  %s1045_s15, 128, %s1047_s18, [#allocation5]  }
 0x619   :  { %v1035_v15 = vpop.f32.mrf.mxu2 }
 0x61a   :  { %1561 = dma.done.wait [#allocation5], 128  }
 0x61b   :  { %1562 = vsyncadd [#allocation5], 4294967168 }
 0x61c   :  { %1054 = vsyncpa [#allocation4], 1 }
 0x61d   :  { %1055 = vsyncpa [#allocation5], 1 }

</bundles_post_ra>
